<compile_context>
chip_gen: v5e
topology: v5e:2x2
jax: 0.10.0
libtpu: 0.0.40
codegen_flags: <defaults>
</compile_context>

<pallas_src>
import jax
import jax.numpy as jnp
from jax.experimental import pallas as pl
from jax.experimental.pallas import tpu as pltpu


def _act_kernel(w_ref, x_ref, o_ref):
    # w_ref: (1, block_d) weight slice, broadcast over the tile's rows
    # x_ref: (tm, block_d) tile of the (row-packed) input
    x = x_ref[...].astype(o_ref.dtype)
    w = w_ref[...].astype(o_ref.dtype)
    o_ref[...] = x * w


def _lane_pack_factor(M, dim, max_lanes):
    """Largest k with k | M and k*dim <= max_lanes; prefer (k*dim) % 128 == 0."""
    if dim > max_lanes:
        return 1
    best_aligned, best_any, found_aligned = 1, 1, False
    for k in range(1, max_lanes // dim + 1):
        if M % k == 0:
            best_any = k
            if (k * dim) % 128 == 0:
                best_aligned = k
                found_aligned = True
    return best_aligned if found_aligned else best_any


def _choose_tm(R, block_d, itemsize, cap_bytes):
    """Rows per tile so one block stays under cap_bytes (soft VMEM budget)."""
    rows = cap_bytes // max(1, block_d * itemsize)
    if rows >= R:
        return R  # full-rows block (allowed regardless of 8-alignment)
    if rows >= 32:
        return (rows // 32) * 32  # multiple of 32: safe sublane tiling for f32/bf16/int8
    return max(8, (rows // 8) * 8)


def activate_layer(x, weight, *, max_lanes=2048, block_bytes=2 * 1024 * 1024):
    """Pallas equivalent of ActivateLayer.forward: x * weight (broadcast over last dim)."""
    dim = weight.shape[0]
    assert x.shape[-1] == dim, "last dim of x must equal weight dim"

    orig_shape = x.shape
    out_dtype = jnp.promote_types(x.dtype, weight.dtype)

    x2 = x.reshape(-1, dim)  # (M, dim), no padding / extra HBM copy
    M = x2.shape[0]

    # Lane-dense packing for narrow dim: the weight broadcast is periodic with
    # period `dim` along the flat array, so (M, dim) -> (M/k, k*dim) with a
    # k-tiled weight is exactly equivalent.
    k = _lane_pack_factor(M, dim, max_lanes)
    W = k * dim
    R = M // k
    if k > 1:
        x2 = x2.reshape(R, W)
        w2 = jnp.tile(weight, k).reshape(1, W)
    else:
        w2 = weight.reshape(1, W)

    # Lane blocking only if the packed row is wider than max_lanes.
    # (block_d is either the full row width or a multiple of 128.)
    block_d = W if W <= max_lanes else max_lanes

    itemsize = jnp.dtype(x.dtype).itemsize
    tm = _choose_tm(R, block_d, itemsize, block_bytes)

    grid = (pl.cdiv(R, tm), pl.cdiv(W, block_d))

    out = pl.pallas_call(
        _act_kernel,
        out_shape=jax.ShapeDtypeStruct((R, W), out_dtype),
        grid_spec=pltpu.PrefetchScalarGridSpec(
            num_scalar_prefetch=0,
            grid=grid,
            in_specs=[
                # weight: tracks only the lane axis; same block across all row
                # steps, so it stays VMEM-resident (no re-DMA per row tile).
                pl.BlockSpec((1, block_d), lambda i, j: (0, j)),
                # x tile
                pl.BlockSpec((tm, block_d), lambda i, j: (i, j)),
            ],
            out_specs=pl.BlockSpec((tm, block_d), lambda i, j: (i, j)),
        ),
        compiler_params=pltpu.CompilerParams(
            dimension_semantics=("parallel", "parallel"),
            vmem_limit_bytes=48 * 1024 * 1024,
        ),
    )(w2, x2)

    return out.reshape(orig_shape)


if __name__ == "__main__":
    key = jax.random.PRNGKey(0)

    # --- Primary check: matches the module spec (dim=32, weight = ones) ---
    dim = 32
    batch, seq = 2, 8
    k0, k1, k2, k3 = jax.random.split(key, 4)
    x = jax.random.normal(k0, (batch, seq, dim), dtype=jnp.float32)
    weight = jnp.ones((dim,), dtype=jnp.float32)  # nn.Parameter(th.ones(dim))

    y = jax.block_until_ready(activate_layer(x, weight))
    ref = x * weight
    assert y.shape == x.shape
    assert jnp.allclose(y, ref, atol=1e-6), "mismatch vs reference (primary)"

    # --- Secondary check: odd shapes (no 128-aligned packing available) ---
    x_b = jax.random.normal(k1, (3, 5, 48), dtype=jnp.float32)
    w_b = jax.random.normal(k2, (48,), dtype=jnp.float32)
    y_b = jax.block_until_ready(activate_layer(x_b, w_b))
    assert jnp.allclose(y_b, x_b * w_b, atol=1e-6), "mismatch vs reference (odd shapes)"

    # --- Tertiary check: small block budget to exercise the multi-step grid ---
    x_c = jax.random.normal(k3, (64, 256, 32), dtype=jnp.float32)
    w_c = jnp.linspace(-1.0, 1.0, 32, dtype=jnp.float32)
    y_c = jax.block_until_ready(activate_layer(x_c, w_c, block_bytes=64 * 1024))
    assert jnp.allclose(y_c, x_c * w_c, atol=1e-6), "mismatch vs reference (tiled grid)"

    # --- Quaternary check: bf16 input x f32 weight (promotion path) ---
    x_d = jax.random.normal(k0, (4, 16, 32), dtype=jnp.bfloat16)
    y_d = jax.block_until_ready(activate_layer(x_d, w_c))
    assert y_d.dtype == jnp.float32
    assert jnp.allclose(y_d, x_d.astype(jnp.float32) * w_c, atol=1e-2), \
        "mismatch vs reference (bf16 promotion)"

    print("KERNEL_OK")
</pallas_src>

<mosaic_0001>
module attributes {stable_mosaic.version = 11 : i64} {
  func.func @_act_kernel(%arg0: i32, %arg1: i32, %arg2: memref<1x512xf32, #tpu.memory_space<vmem>>, %arg3: memref<1x512xf32, #tpu.memory_space<vmem>>, %arg4: memref<1x512xf32, #tpu.memory_space<vmem>>) attributes {dimension_semantics = [#tpu.dimension_semantics<parallel>, #tpu.dimension_semantics<parallel>], iteration_bounds = array<i64: 1, 1>, scalar_prefetch = 0 : i64, scratch_operands = 0 : i64, tpu.core_type = #tpu.core_type<tc>, window_params = [{transform_indices = @transform_0, window_bounds = array<i64: 1, 512>}, {transform_indices = @transform_1, window_bounds = array<i64: 1, 512>}, {transform_indices = @transform_2, window_bounds = array<i64: 1, 512>}]} {
    %c0 = arith.constant 0 : index
    %c0_0 = arith.constant 0 : index
    %0 = vector.load %arg3[%c0, %c0_0] : memref<1x512xf32, #tpu.memory_space<vmem>>, vector<1x512xf32>
    %c0_1 = arith.constant 0 : index
    %c0_2 = arith.constant 0 : index
    %1 = vector.load %arg2[%c0_1, %c0_2] : memref<1x512xf32, #tpu.memory_space<vmem>>, vector<1x512xf32>
    %2 = arith.mulf %0, %1 : vector<1x512xf32>
    %c0_3 = arith.constant 0 : index
    %c0_4 = arith.constant 0 : index
    %3 = vector.load %arg4[%c0_3, %c0_4] : memref<1x512xf32, #tpu.memory_space<vmem>>, vector<1x512xf32>
    tpu.vector_store %arg4[%c0_3, %c0_4], %2 {strides = array<i32>} : memref<1x512xf32, #tpu.memory_space<vmem>>, vector<1x512xf32>,
    return
  }
  func.func @transform_0(%arg0: i32, %arg1: i32) -> (i32, i32) {
    %c0_i32 = arith.constant 0 : i32
    %c0_i32_0 = arith.constant 0 : i32
    return %c0_i32, %arg1 : i32, i32
  }
  func.func @transform_1(%arg0: i32, %arg1: i32) -> (i32, i32) {
    %c0_i32 = arith.constant 0 : i32
    return %arg0, %arg1 : i32, i32
  }
  func.func @transform_2(%arg0: i32, %arg1: i32) -> (i32, i32) {
    %c0_i32 = arith.constant 0 : i32
    return %arg0, %arg1 : i32, i32
  }
}

</mosaic_0001>

<bundles_post_ra>
// kernel: tpu_custom_call.1
= control target key start
LH: loop header
LB: loop body
LE: loop exit
PB: predicated region body
PF: predicated region fallthrough
CT: control target
= control target key end

     0   :  { %7 = vsyncpa [#allocation3], 0  ;;  %s174_s0 = inlined_call_operand.hbm [shape: f32[1,512], index: 0, kind: input, shape index: {}]   ;;  %s175_s1 = inlined_call_operand.hbm [shape: f32[1,512], index: 1, kind: input, shape index: {}]   ;;  %s176_s2 = inlined_call_operand.hbm [shape: f32[1,512], index: 2, kind: output, shape index: {}]  }
   0x1   :  { %8 = vsyncpa [#allocation6], 0 }
   0x2   :  { %9 = vsyncpa [#allocation4], 0  ;;  %s15_s11 = sshll.u32 %s174_s0, 4  ;;  %s147_s12 = smov [#allocation2]   ;;  %s16_s11 = int_to_ptr.hbm [resolvable:$true] %s15_s11 }
   0x3   :  { %s17_s13 = sshll.u32 %s147_s12, 4  ;;  %s26_s16 = sshll.u32 %s175_s1, 4  ;;  %s18_s13 = int_to_ptr.vmem [resolvable:$true] %s17_s13  ;;  %s27_s16 = int_to_ptr.hbm [resolvable:$true] %s26_s16 }
   0x4   :  { %20 = dma.hbm_to_vmem [thread:$0]  %s16_s11, 64, %s18_s13, [#allocation3]  }
   0x5   :  { %s148_s17 = smov [#allocation5]  }
   0x6   :  { %s28_s18 = sshll.u32 %s148_s17, 4  ;;  %s29_s18 = int_to_ptr.vmem [resolvable:$true] %s28_s18 }
   0x7   :  { %31 = dma.hbm_to_vmem [thread:$0]  %s27_s16, 64, %s29_s18, [#allocation6]  }
   0x8   :  { %141 = dma.done.wait [#allocation3], 64  }
   0x9   :  { %142 = vsyncadd [#allocation3], 4294967232 }
   0xa   :  { %143 = dma.done.wait [#allocation6], 64  }
   0xb   :  { %144 = vsyncadd [#allocation6], 4294967232  ;;  %v43_v0 = vlaneseq  ;;  %s149_s0 = smov [#allocation7]   ;;  %s55_s22 = sshll.u32 %s176_s2, 4  ;;  %v40_v1 = vld [vmem:[#allocation5] sm:$0xf]  ;;  %s56_s22 = int_to_ptr.hbm [resolvable:$true] %s55_s22 }
   0xc   :  { %s53_s19 = sshll.u32 %s149_s0, 4  ;;  %v41_v2 = vld [vmem:[#allocation2] sm:$0xf]  ;;  %s54_s19 = int_to_ptr.vmem [resolvable:$true] %s53_s19 }
   0xd   :  { %vm45_vm0 = vcmp.lt.s32.totalorder %v43_v0, 512  ;;  %v42_v3 = vmul.f32 %v41_v2, %v40_v1 }
   0xf   :  { %47 = vst.msk [vmem:[#allocation7] sm:$0xf] %vm45_vm0, %v42_v3 }
  0x10   :  { %58 = dma.vmem_to_hbm [thread:$0]  %s54_s19, 64, %s56_s22, [#allocation4]  }
  0x11   :  { %145 = dma.done.wait [#allocation4], 64  }
  0x12   :  { %146 = vsyncadd [#allocation4], 4294967232 }
  0x13   :  { %63 = vsyncpa [#allocation3], 1 }
  0x14   :  { %64 = vsyncpa [#allocation6], 1 }
  0x15   :  { %65 = vsyncpa [#allocation4], 1 }

</bundles_post_ra>
